<compile_context>
chip_gen: v5e
topology: v5e:2x2
jax: 0.10.0
libtpu: 0.0.40
codegen_flags: <defaults>
</compile_context>

<pallas_src>
import functools
import math

import jax
import jax.numpy as jnp
from jax.experimental import pallas as pl
from jax.experimental.pallas import tpu as pltpu


def _mymodel_kernel(s_ref, x_ref, t_ref, o2_ref, o3_ref, o4_ref):
    # Pure VPU elementwise hot path: 2 tile reads, 3 full-lane-width unmasked
    # tile stores; each output written exactly once from vregs.
    dt = x_ref.dtype
    add = s_ref[0].astype(dt)
    mul = s_ref[1].astype(dt)
    p2 = x_ref[...] + t_ref[...]
    p3 = p2 + add
    p4 = p3 * mul
    o2_ref[...] = p2
    o3_ref[...] = p3
    o4_ref[...] = p4


# ~2 MiB per stream per tile.  5 streams (2 in + 3 out) double-buffered
# => ~20 MiB live, safely under the explicit 32 MiB scoped-VMEM budget on
# v5e/v6e (128 MiB physical) and v7x (64 MiB per TC).
_TILE_BYTES = 2 * 1024 * 1024
_VMEM_LIMIT_BYTES = 32 * 1024 * 1024
# Lane-dense slab widths (multiples of 128), preferred largest-first.
_LANE_WIDTH_CANDIDATES = (512, 384, 256, 128)
# Only use Pallas when the grid has >= ~2 pipelined steps.
_PALLAS_MIN_BYTES = 4 << 20


def _pick_cols(total: int):
    """Largest lane-dense width that exactly divides total (no padding needed)."""
    for c in _LANE_WIDTH_CANDIDATES:
        if total % c == 0:
            return c
    return None


def _dimension_semantics(num_steps: int):
    """Shard the tile stream across both TensorCores on v7x; no-op elsewhere."""
    kind = ""
    try:
        kind = jax.devices()[0].device_kind.lower()
    except Exception:
        pass
    if "v7" in kind and num_steps >= 2:
        return (pltpu.CORE_PARALLEL,)
    return ("parallel",)


def mymodel_forward(x, mytensor, elem_add: int, elem_multiply: int, *, use_pallas=None):
    """x, mytensor: same-shape float arrays. Returns (problem2, problem3, problem4)."""
    assert x.shape == mytensor.shape, "mytensor must match x's shape"
    orig_shape = x.shape
    total = math.prod(orig_shape)
    itemsize = jnp.dtype(x.dtype).itemsize

    def _fused_jnp():
        p2 = x + mytensor
        p3 = p2 + jnp.asarray(elem_add, dtype=p2.dtype)
        p4 = p3 * jnp.asarray(elem_multiply, dtype=p3.dtype)
        return p2, p3, p4

    cols = _pick_cols(total)

    if use_pallas is None:
        use_pallas = total * itemsize >= _PALLAS_MIN_BYTES
    # No lane-dense exact factorization -> fused XLA path (avoids any pad/slice
    # copy passes, which would roughly double HBM traffic).
    if not use_pallas or cols is None:
        return _fused_jnp()

    rows = total // cols

    # Sublane granularity: f32 -> 8, bf16 -> 16, int8/fp8 -> 32.
    sub = 8 * max(1, 4 // itemsize)
    tile_r = max(sub, (_TILE_BYTES // (cols * itemsize)) // sub * sub)
    if tile_r >= rows:
        tile_r = rows  # single block spanning the full second-to-last dim
    grid = (pl.cdiv(rows, tile_r),)  # boundary block (if any) is masked, not padded

    # Contiguous row-major reshapes: free (no copy), and lane-dense by construction.
    x2d = jnp.reshape(x, (rows, cols))
    t2d = jnp.reshape(mytensor, (rows, cols))
    # Runtime scalars in SMEM -> no recompile per (elem_add, elem_multiply) pair.
    scal = jnp.asarray([elem_add, elem_multiply], dtype=jnp.float32)

    spec = pl.BlockSpec((tile_r, cols), lambda i: (i, 0))
    out_shape = jax.ShapeDtypeStruct((rows, cols), x.dtype)

    o2, o3, o4 = pl.pallas_call(
        _mymodel_kernel,
        out_shape=(out_shape, out_shape, out_shape),
        grid=grid,
        in_specs=[
            pl.BlockSpec(memory_space=pltpu.MemorySpace.SMEM),  # (elem_add, elem_multiply)
            spec,
            spec,
        ],
        out_specs=(spec, spec, spec),
        compiler_params=pltpu.CompilerParams(
            dimension_semantics=_dimension_semantics(grid[0]),
            vmem_limit_bytes=_VMEM_LIMIT_BYTES,
        ),
    )(scal, x2d, t2d)

    return (
        o2.reshape(orig_shape),
        o3.reshape(orig_shape),
        o4.reshape(orig_shape),
    )


def _check(x, mytensor, elem_add, elem_multiply):
    fwd = jax.jit(
        functools.partial(
            mymodel_forward,
            elem_add=elem_add,
            elem_multiply=elem_multiply,
            use_pallas=True,  # force the Pallas path even at tiny sizes
        )
    )
    p2, p3, p4 = jax.block_until_ready(fwd(x, mytensor))

    r2 = x + mytensor
    r3 = r2 + elem_add
    r4 = r3 * elem_multiply
    assert jnp.allclose(p2, r2), "problem2 mismatch"
    assert jnp.allclose(p3, r3), "problem3 mismatch"
    assert jnp.allclose(p4, r4), "problem4 mismatch"


if __name__ == "__main__":
    key = jax.random.PRNGKey(0)
    ks = jax.random.split(key, 8)

    elem_add = 3
    elem_multiply = 5

    # 1) Small module-spec shape: single-block Pallas path (forced), cols=512, rows=4.
    s = (2, 4, 16, 16)
    _check(
        jax.random.normal(ks[0], s, dtype=jnp.float32),
        jax.random.normal(ks[1], s, dtype=jnp.float32),
        elem_add,
        elem_multiply,
    )

    # 2) Multi-step pipelined grid: rows=3072, tile_r=1024 -> grid=3 (even split).
    s = (2, 4, 512, 384)
    _check(
        jax.random.normal(ks[2], s, dtype=jnp.float32),
        jax.random.normal(ks[3], s, dtype=jnp.float32),
        elem_add,
        elem_multiply,
    )

    # 3) Partial boundary block: rows=2880 -> blocks of 1024, 1024, 832 (masked, no pad).
    s = (2, 4, 360, 512)
    _check(
        jax.random.normal(ks[4], s, dtype=jnp.float32),
        jax.random.normal(ks[5], s, dtype=jnp.float32),
        elem_add,
        elem_multiply,
    )

    # 4) No multiple-of-128 factorization (210 elems) -> fused-jnp fallback path.
    s = (2, 3, 5, 7)
    _check(
        jax.random.normal(ks[6], s, dtype=jnp.float32),
        jax.random.normal(ks[7], s, dtype=jnp.float32),
        elem_add,
        elem_multiply,
    )

    print("KERNEL_OK")
</pallas_src>

<mosaic_0001>
module attributes {stable_mosaic.version = 11 : i64} {
  func.func @_mymodel_kernel(%arg0: i32, %arg1: memref<2xf32, #tpu.memory_space<smem>>, %arg2: memref<4x512xf32, #tpu.memory_space<vmem>>, %arg3: memref<4x512xf32, #tpu.memory_space<vmem>>, %arg4: memref<4x512xf32, #tpu.memory_space<vmem>>, %arg5: memref<4x512xf32, #tpu.memory_space<vmem>>, %arg6: memref<4x512xf32, #tpu.memory_space<vmem>>) attributes {dimension_semantics = [#tpu.dimension_semantics<parallel>], iteration_bounds = array<i64: 1>, scalar_prefetch = 0 : i64, scratch_operands = 0 : i64, tpu.core_type = #tpu.core_type<tc>, window_params = [{transform_indices = @transform_0, window_bounds = array<i64: 2>}, {transform_indices = @transform_1, window_bounds = array<i64: 4, 512>}, {transform_indices = @transform_2, window_bounds = array<i64: 4, 512>}, {transform_indices = @transform_3, window_bounds = array<i64: 4, 512>}, {transform_indices = @transform_4, window_bounds = array<i64: 4, 512>}, {transform_indices = @transform_5, window_bounds = array<i64: 4, 512>}]} {
    %c0 = arith.constant 0 : index
    %0 = memref.load %arg1[%c0] : memref<2xf32, #tpu.memory_space<smem>>
    %c1 = arith.constant 1 : index
    %1 = memref.load %arg1[%c1] : memref<2xf32, #tpu.memory_space<smem>>
    %c0_0 = arith.constant 0 : index
    %c0_1 = arith.constant 0 : index
    %2 = vector.load %arg2[%c0_0, %c0_1] : memref<4x512xf32, #tpu.memory_space<vmem>>, vector<4x512xf32>
    %c0_2 = arith.constant 0 : index
    %c0_3 = arith.constant 0 : index
    %3 = vector.load %arg3[%c0_2, %c0_3] : memref<4x512xf32, #tpu.memory_space<vmem>>, vector<4x512xf32>
    %4 = arith.addf %2, %3 : vector<4x512xf32>
    %5 = vector.broadcast %0 : f32 to vector<4x512xf32>
    %6 = arith.addf %4, %5 : vector<4x512xf32>
    %7 = vector.broadcast %1 : f32 to vector<4x512xf32>
    %8 = arith.mulf %6, %7 : vector<4x512xf32>
    %c0_4 = arith.constant 0 : index
    %c0_5 = arith.constant 0 : index
    %9 = vector.load %arg4[%c0_4, %c0_5] : memref<4x512xf32, #tpu.memory_space<vmem>>, vector<4x512xf32>
    tpu.vector_store %arg4[%c0_4, %c0_5], %4 {strides = array<i32>} : memref<4x512xf32, #tpu.memory_space<vmem>>, vector<4x512xf32>,
    %c0_6 = arith.constant 0 : index
    %c0_7 = arith.constant 0 : index
    %10 = vector.load %arg5[%c0_6, %c0_7] : memref<4x512xf32, #tpu.memory_space<vmem>>, vector<4x512xf32>
    tpu.vector_store %arg5[%c0_6, %c0_7], %6 {strides = array<i32>} : memref<4x512xf32, #tpu.memory_space<vmem>>, vector<4x512xf32>,
    %c0_8 = arith.constant 0 : index
    %c0_9 = arith.constant 0 : index
    %11 = vector.load %arg6[%c0_8, %c0_9] : memref<4x512xf32, #tpu.memory_space<vmem>>, vector<4x512xf32>
    tpu.vector_store %arg6[%c0_8, %c0_9], %8 {strides = array<i32>} : memref<4x512xf32, #tpu.memory_space<vmem>>, vector<4x512xf32>,
    return
  }
  func.func @transform_0(%arg0: i32) -> i32 {
    %c0_i32 = arith.constant 0 : i32
    %c0_i32_0 = arith.constant 0 : i32
    return %c0_i32 : i32
  }
  func.func @transform_1(%arg0: i32) -> (i32, i32) {
    %c0_i32 = arith.constant 0 : i32
    %c0_i32_0 = arith.constant 0 : i32
    return %arg0, %c0_i32 : i32, i32
  }
  func.func @transform_2(%arg0: i32) -> (i32, i32) {
    %c0_i32 = arith.constant 0 : i32
    %c0_i32_0 = arith.constant 0 : i32
    return %arg0, %c0_i32 : i32, i32
  }
  func.func @transform_3(%arg0: i32) -> (i32, i32) {
    %c0_i32 = arith.constant 0 : i32
    %c0_i32_0 = arith.constant 0 : i32
    return %arg0, %c0_i32 : i32, i32
  }
  func.func @transform_4(%arg0: i32) -> (i32, i32) {
    %c0_i32 = arith.constant 0 : i32
    %c0_i32_0 = arith.constant 0 : i32
    return %arg0, %c0_i32 : i32, i32
  }
  func.func @transform_5(%arg0: i32) -> (i32, i32) {
    %c0_i32 = arith.constant 0 : i32
    %c0_i32_0 = arith.constant 0 : i32
    return %arg0, %c0_i32 : i32, i32
  }
}

</mosaic_0001>

<bundles_post_ra>
// kernel: mymodel_forward.1
= control target key start
LH: loop header
LB: loop body
LE: loop exit
PB: predicated region body
PF: predicated region fallthrough
CT: control target
= control target key end

     0   :  { %11 = vsyncpa [#allocation3], 0  ;;  %s79_s21 = smov [#allocation2]   ;;  %s143_s0 = inlined_call_operand.vmem [shape: f32[2], index: 0, kind: input, shape index: {}]   ;;  %s144_s1 = inlined_call_operand.vmem [shape: f32[4,512], index: 1, kind: input, shape index: {}]   ;;  %s145_s2 = inlined_call_operand.vmem [shape: f32[4,512], index: 2, kind: input, shape index: {}]   ;;  %s146_s3 = inlined_call_operand.vmem [shape: f32[4,512], index: 3, kind: output, shape index: {0}]   ;;  %s147_s4 = inlined_call_operand.vmem [shape: f32[4,512], index: 4, kind: output, shape index: {1}]   ;;  %s148_s5 = inlined_call_operand.vmem [shape: f32[4,512], index: 5, kind: output, shape index: {2}]  }
   0x1   :  { %s17_s20 = sshll.u32 %s143_s0, 4  ;;  %s18_s20 = int_to_ptr.vmem [resolvable:$true] %s17_s20 }
   0x2   :  { %20 = dma.vmem_to_smem %s18_s20, 16, %s79_s21, [#allocation3]  }
   0x3   :  { %77 = dma.done.wait [#allocation3], 16  }
   0x4   :  { %78 = vsyncadd [#allocation3], 4294967280 }
   0x5   :  { %29 = sfence }
   0x6   :  { %v32_v0 = vld [vmem:[%s144_s1] sm:$0xff]  ;;  %v33_v2 = vld [vmem:[%s144_s1 + $0x8] sm:$0xff]  ;;  %s30_s28 = sld [smem:[#allocation2]] }
   0x7   :  { %v34_v1 = vld [vmem:[%s145_s2] sm:$0xff]  ;;  %v35_v4 = vld [vmem:[%s145_s2 + $0x8] sm:$0xff]  ;;  %s63_s30 = sld [smem:[#allocation2 + $0x1]] }
   0x8   :  { %v36_v3 = vadd.f32 %v34_v1, %v32_v0  ;;  %v37_v5 = vadd.f32 %v35_v4, %v33_v2 }
   0xa   :  { %44 = vst [vmem:[%s146_s3] sm:$0xff] %v36_v3 }
   0xb   :  { %45 = vst [vmem:[%s146_s3 + $0x8] sm:$0xff] %v37_v5 }
   0xc   :  { %v38_v6 = vstv %s30_s28 }
   0xd   :  { %v39_v7 = vadd.f32 %v38_v6, %v36_v3  ;;  %v40_v8 = vadd.f32 %v38_v6, %v37_v5  ;;  %v41_v9 = vstv %s63_s30 }
   0xf   :  { %46 = vst [vmem:[%s147_s4] sm:$0xff] %v39_v7  ;;  %v42_v10 = vmul.f32 %v41_v9, %v39_v7  ;;  %v43_v11 = vmul.f32 %v41_v9, %v40_v8 }
  0x10   :  { %47 = vst [vmem:[%s147_s4 + $0x8] sm:$0xff] %v40_v8 }
  0x11   :  { %48 = vst [vmem:[%s148_s5] sm:$0xff] %v42_v10 }
  0x12   :  { %49 = vst [vmem:[%s148_s5 + $0x8] sm:$0xff] %v43_v11 }
  0x13   :  { %62 = vsyncpa [#allocation3], 1 }

</bundles_post_ra>
